<compile_context>
chip_gen: v7x
topology: tpu7x:2x2x1
jax: 0.10.0
libtpu: 0.0.40
codegen_flags: <defaults>
</compile_context>

<pallas_src>
import functools

import jax
import jax.numpy as jnp
from jax.experimental import pallas as pl
from jax.experimental.pallas import tpu as pltpu


def _sigmoid(v):
    return 1.0 / (1.0 + jnp.exp(-v))


# --------------------------------------------------------------------------- #
# Pass 1: global average pool (tiled accumulate) + channel-gate MLP
# --------------------------------------------------------------------------- #
def _reduce_cg_kernel(x_ref, w1_ref, b1_ref, w2_ref, b2_ref, cg_ref, acc_ref,
                      *, inv_hw):
    t = pl.program_id(1)

    @pl.when(t == 0)
    def _():
        acc_ref[...] = jnp.zeros_like(acc_ref)

    x = x_ref[0]                                             # (C, T)  f32
    acc_ref[...] += jnp.sum(x, axis=1, keepdims=True)        # (C, 1) partial sum

    @pl.when(t == pl.num_programs(1) - 1)
    def _():
        pooled = acc_ref[...] * inv_hw                       # (C, 1)
        h = jnp.dot(w1_ref[...], pooled,
                    preferred_element_type=jnp.float32) + b1_ref[...]   # (Crp, 1)
        h = jnp.maximum(h, 0.0)                              # ReLU
        z = jnp.dot(w2_ref[...], h,
                    preferred_element_type=jnp.float32) + b2_ref[...]   # (C, 1)
        cg_ref[0] = _sigmoid(z)                              # channel gate


# --------------------------------------------------------------------------- #
# Pass 2: spatial gate (1x1 conv + sigmoid) + fused combine
# --------------------------------------------------------------------------- #
def _apply_kernel(x_ref, cg_ref, wsp_ref, o_ref):
    x = x_ref[0]                                             # (C, T)
    sg = _sigmoid(jnp.dot(wsp_ref[...], x,
                          preferred_element_type=jnp.float32))          # (1, T)
    # (C,1) + (1,T) broadcast -> (C,T); one add + one mul per element.
    o_ref[0] = ((cg_ref[0] + sg) * x).astype(o_ref.dtype)


# --------------------------------------------------------------------------- #
# Wrapper
# --------------------------------------------------------------------------- #
def _pick_hw_tile(hw, c, itemsize=4):
    """Largest 128-multiple tile that divides HW and keeps the apply pass's
    double-buffered in+out blocks (4 * C * T * itemsize bytes) under ~8 MiB,
    safe for v5e's 16 MiB scoped-VMEM default and v7x's 64 MiB physical VMEM."""
    budget_bytes = 8 * 1024 * 1024
    max_elems = budget_bytes // (4 * itemsize)
    cap = (max_elems // max(c, 1)) // 128 * 128
    cap = max(128, min(cap, 4096))
    if hw <= cap:
        return hw                                  # block == full dim is legal
    for t in range(cap, 0, -128):
        if hw % t == 0:
            return t
    # No 128-multiple divisor <= cap: fall back to the full spatial extent.
    # TODO(synk): pad HW to a multiple of 128 to regain tiling for awkward H*W.
    return hw


def scse_block_nchw(x_nchw, params):
    """PyTorch-compatible forward. x_nchw: (B, C, H, W) float32.

    Params are stored in PyTorch-native orientation:
      w1  (Cr, C)   = Linear(C, Cr).weight
      b1  (Cr, 1)   = Linear(C, Cr).bias[:, None]
      w2  (C, Cr)   = Linear(Cr, C).weight
      b2  (C, 1)    = Linear(Cr, C).bias[:, None]
      wsp (1, C)    = Conv2d(C, 1, 1, bias=False).weight.reshape(1, C)
    """
    B, C, H, W = x_nchw.shape
    HW = H * W
    x = x_nchw.reshape(B, C, HW)                   # free reshape, no transpose

    w1, b1, w2, b2, wsp = (params["w1"], params["b1"], params["w2"],
                           params["b2"], params["wsp"])

    # Pad the tiny hidden width up to >= 8 (exact: zero rows -> ReLU(0)=0,
    # ignored by the zero columns of w2).
    Cr = w1.shape[0]
    Crp = max(8, -(-Cr // 8) * 8)
    if Crp != Cr:
        w1 = jnp.pad(w1, ((0, Crp - Cr), (0, 0)))
        b1 = jnp.pad(b1, ((0, Crp - Cr), (0, 0)))
        w2 = jnp.pad(w2, ((0, 0), (0, Crp - Cr)))

    T = _pick_hw_tile(HW, C, x.dtype.itemsize)
    n_t = HW // T

    # ---- pass 1: pooled sum + channel gate ---------------------------------
    cg = pl.pallas_call(
        functools.partial(_reduce_cg_kernel, inv_hw=1.0 / HW),
        out_shape=jax.ShapeDtypeStruct((B, C, 1), jnp.float32),
        grid_spec=pltpu.PrefetchScalarGridSpec(
            num_scalar_prefetch=0,
            grid=(B, n_t),
            in_specs=[
                pl.BlockSpec((1, C, T), lambda b, t: (b, 0, t)),   # x tile
                pl.BlockSpec((Crp, C),  lambda b, t: (0, 0)),      # W1 (resident)
                pl.BlockSpec((Crp, 1),  lambda b, t: (0, 0)),      # b1
                pl.BlockSpec((C, Crp),  lambda b, t: (0, 0)),      # W2
                pl.BlockSpec((C, 1),    lambda b, t: (0, 0)),      # b2
            ],
            out_specs=pl.BlockSpec((1, C, 1), lambda b, t: (b, 0, 0)),
            scratch_shapes=[pltpu.VMEM((C, 1), jnp.float32)],      # pool acc
        ),
        compiler_params=pltpu.CompilerParams(
            dimension_semantics=("parallel", "arbitrary")),
    )(x, w1, b1, w2, b2)

    # ---- pass 2: spatial gate + combine (fully parallel grid) --------------
    out = pl.pallas_call(
        _apply_kernel,
        out_shape=jax.ShapeDtypeStruct((B, C, HW), x.dtype),
        grid_spec=pltpu.PrefetchScalarGridSpec(
            num_scalar_prefetch=0,
            grid=(B, n_t),
            in_specs=[
                pl.BlockSpec((1, C, T), lambda b, t: (b, 0, t)),   # x tile
                pl.BlockSpec((1, C, 1), lambda b, t: (b, 0, 0)),   # channel gate
                pl.BlockSpec((1, C),    lambda b, t: (0, 0)),      # 1x1 conv weight
            ],
            out_specs=pl.BlockSpec((1, C, T), lambda b, t: (b, 0, t)),
        ),
        compiler_params=pltpu.CompilerParams(
            dimension_semantics=("parallel", "parallel")),
    )(x, cg, wsp)

    return out.reshape(B, C, H, W)


def init_params(key, in_channels, reduction=16):
    """Deterministic synthetic parameters matching SCSEBlock.__init__ shapes
    (PyTorch-native weight orientation)."""
    hidden = in_channels // reduction
    assert hidden >= 1, "in_channels must be >= reduction"
    k1, k2, k3, k4, k5 = jax.random.split(key, 5)
    w1 = jax.random.normal(k1, (hidden, in_channels), jnp.float32) * 0.1
    b1 = jax.random.normal(k2, (hidden, 1), jnp.float32) * 0.1
    w2 = jax.random.normal(k3, (in_channels, hidden), jnp.float32) * 0.1
    b2 = jax.random.normal(k4, (in_channels, 1), jnp.float32) * 0.1
    wsp = jax.random.normal(k5, (1, in_channels), jnp.float32) * 0.1
    return {"w1": w1, "b1": b1, "w2": w2, "b2": b2, "wsp": wsp}


def _reference(x_nchw, p):
    """Pure-JAX reference mirroring the PyTorch forward."""
    pooled = jnp.mean(x_nchw, axis=(2, 3))                          # (B, C)
    h = jnp.maximum(pooled @ p["w1"].T + p["b1"][:, 0], 0.0)        # (B, Cr)
    cg = jax.nn.sigmoid(h @ p["w2"].T + p["b2"][:, 0])              # (B, C)
    sg = jax.nn.sigmoid(jnp.einsum("bchw,c->bhw", x_nchw, p["wsp"][0]))
    return sg[:, None] * x_nchw + cg[:, :, None, None] * x_nchw


if __name__ == "__main__":
    B, C, H, W = 2, 32, 16, 16      # reduction=16 -> hidden width 2 (padded to 8)
    key = jax.random.PRNGKey(0)
    kx, kp = jax.random.split(key)
    x = jax.random.normal(kx, (B, C, H, W), jnp.float32)
    params = init_params(kp, C, reduction=16)

    out = jax.block_until_ready(scse_block_nchw(x, params))
    ref = _reference(x, params)
    assert out.shape == (B, C, H, W)
    assert jnp.allclose(out, ref, atol=1e-4, rtol=1e-4), "mismatch vs reference"
    print("KERNEL_OK")
</pallas_src>

<mosaic_0001>
module attributes {stable_mosaic.version = 11 : i64} {
  func.func @_reduce_cg_kernel(%arg0: i32, %arg1: i32, %arg2: memref<1x32x256xf32, #tpu.memory_space<vmem>>, %arg3: memref<8x32xf32, #tpu.memory_space<vmem>>, %arg4: memref<8x1xf32, #tpu.memory_space<vmem>>, %arg5: memref<32x8xf32, #tpu.memory_space<vmem>>, %arg6: memref<32x1xf32, #tpu.memory_space<vmem>>, %arg7: memref<1x32x1xf32, #tpu.memory_space<vmem>>, %arg8: memref<32x1xf32, #tpu.memory_space<vmem>>) attributes {dimension_semantics = [#tpu.dimension_semantics<parallel>, #tpu.dimension_semantics<arbitrary>], iteration_bounds = array<i64: 2, 1>, scalar_prefetch = 0 : i64, scratch_operands = 1 : i64, tpu.core_type = #tpu.core_type<tc>, window_params = [{transform_indices = @transform_0, window_bounds = array<i64: 1, 32, 256>}, {pipeline_mode = #tpu.pipeline_mode<synchronous>, transform_indices = @transform_1, window_bounds = array<i64: 8, 32>}, {pipeline_mode = #tpu.pipeline_mode<synchronous>, transform_indices = @transform_2, window_bounds = array<i64: 8, 1>}, {pipeline_mode = #tpu.pipeline_mode<synchronous>, transform_indices = @transform_3, window_bounds = array<i64: 32, 8>}, {pipeline_mode = #tpu.pipeline_mode<synchronous>, transform_indices = @transform_4, window_bounds = array<i64: 32, 1>}, {transform_indices = @transform_5, window_bounds = array<i64: 1, 32, 1>}]} {
    %c0_i32 = arith.constant 0 : i32
    %0 = arith.cmpi eq, %arg1, %c0_i32 : i32
    %1 = arith.extui %0 : i1 to i32
    %c0_i32_0 = arith.constant 0 : i32
    %2 = arith.cmpi ne, %1, %c0_i32_0 : i32
    scf.if %2 {
      %cst_9 = arith.constant 0.000000e+00 : f32
      %13 = vector.broadcast %cst_9 : f32 to vector<32x1xf32>
      %c0_10 = arith.constant 0 : index
      %c0_11 = arith.constant 0 : index
      %14 = vector.load %arg8[%c0_10, %c0_11] : memref<32x1xf32, #tpu.memory_space<vmem>>, vector<32x1xf32>
      tpu.vector_store %arg8[%c0_10, %c0_11], %13 {strides = array<i32>} : memref<32x1xf32, #tpu.memory_space<vmem>>, vector<32x1xf32>,
    } else {
    }
    %c0 = arith.constant 0 : index
    %c0_1 = arith.constant 0 : index
    %c0_2 = arith.constant 0 : index
    %3 = vector.load %arg2[%c0, %c0_1, %c0_2] : memref<1x32x256xf32, #tpu.memory_space<vmem>>, vector<1x32x256xf32>
    %4 = vector.shape_cast %3 : vector<1x32x256xf32> to vector<32x256xf32>
    %c0_3 = arith.constant 0 : index
    %c0_4 = arith.constant 0 : index
    %5 = vector.load %arg8[%c0_3, %c0_4] : memref<32x1xf32, #tpu.memory_space<vmem>>, vector<32x1xf32>
    %cst = arith.constant dense<0.000000e+00> : vector<32xf32>
    %6 = vector.multi_reduction <add>, %4, %cst [1] : vector<32x256xf32> to vector<32xf32>
    %7 = vector.shape_cast %6 : vector<32xf32> to vector<32x1xf32>
    %8 = arith.addf %5, %7 : vector<32x1xf32>
    %c0_5 = arith.constant 0 : index
    %c0_6 = arith.constant 0 : index
    %9 = vector.load %arg8[%c0_5, %c0_6] : memref<32x1xf32, #tpu.memory_space<vmem>>, vector<32x1xf32>
    tpu.vector_store %arg8[%c0_5, %c0_6], %8 {strides = array<i32>} : memref<32x1xf32, #tpu.memory_space<vmem>>, vector<32x1xf32>,
    %c0_i32_7 = arith.constant 0 : i32
    %10 = arith.cmpi eq, %arg1, %c0_i32_7 : i32
    %11 = arith.extui %10 : i1 to i32
    %c0_i32_8 = arith.constant 0 : i32
    %12 = arith.cmpi ne, %11, %c0_i32_8 : i32
    scf.if %12 {
      %c0_9 = arith.constant 0 : index
      %c0_10 = arith.constant 0 : index
      %13 = vector.load %arg8[%c0_9, %c0_10] : memref<32x1xf32, #tpu.memory_space<vmem>>, vector<32x1xf32>
      %cst_11 = arith.constant 3.906250e-03 : f32
      %14 = vector.broadcast %cst_11 : f32 to vector<32x1xf32>
      %15 = arith.mulf %13, %14 : vector<32x1xf32>
      %c0_12 = arith.constant 0 : index
      %c0_13 = arith.constant 0 : index
      %16 = vector.load %arg3[%c0_12, %c0_13] : memref<8x32xf32, #tpu.memory_space<vmem>>, vector<8x32xf32>
      %cst_14 = arith.constant dense<0.000000e+00> : vector<8x1xf32>
      %17 = tpu.matmul %16, %15, %cst_14 {dimension_numbers = #tpu.dot_dimension_numbers<[1], [0], [0], [1], [0, 0, 1, 1], [], []>} : vector<8x32xf32>, vector<32x1xf32>, vector<8x1xf32> -> vector<8x1xf32>
      %c0_15 = arith.constant 0 : index
      %c0_16 = arith.constant 0 : index
      %18 = vector.load %arg4[%c0_15, %c0_16] : memref<8x1xf32, #tpu.memory_space<vmem>>, vector<8x1xf32>
      %19 = arith.addf %17, %18 : vector<8x1xf32>
      %cst_17 = arith.constant 0.000000e+00 : f32
      %20 = vector.broadcast %cst_17 : f32 to vector<8x1xf32>
      %21 = arith.maximumf %19, %20 : vector<8x1xf32>
      %c0_18 = arith.constant 0 : index
      %c0_19 = arith.constant 0 : index
      %22 = vector.load %arg5[%c0_18, %c0_19] : memref<32x8xf32, #tpu.memory_space<vmem>>, vector<32x8xf32>
      %cst_20 = arith.constant dense<0.000000e+00> : vector<32x1xf32>
      %23 = tpu.matmul %22, %21, %cst_20 {dimension_numbers = #tpu.dot_dimension_numbers<[1], [0], [0], [1], [0, 0, 1, 1], [], []>} : vector<32x8xf32>, vector<8x1xf32>, vector<32x1xf32> -> vector<32x1xf32>
      %c0_21 = arith.constant 0 : index
      %c0_22 = arith.constant 0 : index
      %24 = vector.load %arg6[%c0_21, %c0_22] : memref<32x1xf32, #tpu.memory_space<vmem>>, vector<32x1xf32>
      %25 = arith.addf %23, %24 : vector<32x1xf32>
      %cst_23 = arith.constant 0.000000e+00 : f32
      %26 = vector.broadcast %cst_23 : f32 to vector<32x1xf32>
      %27 = arith.subf %26, %25 : vector<32x1xf32>
      %28 = math.exp %27 : vector<32x1xf32>
      %cst_24 = arith.constant 1.000000e+00 : f32
      %29 = vector.broadcast %cst_24 : f32 to vector<32x1xf32>
      %30 = arith.addf %29, %28 : vector<32x1xf32>
      %cst_25 = arith.constant 1.000000e+00 : f32
      %31 = vector.broadcast %cst_25 : f32 to vector<32x1xf32>
      %32 = arith.divf %31, %30 : vector<32x1xf32>
      %c0_26 = arith.constant 0 : index
      %c0_27 = arith.constant 0 : index
      %c0_28 = arith.constant 0 : index
      %33 = vector.load %arg7[%c0_26, %c0_27, %c0_28] : memref<1x32x1xf32, #tpu.memory_space<vmem>>, vector<1x32x1xf32>
      %34 = vector.shape_cast %33 : vector<1x32x1xf32> to vector<32x1xf32>
      %35 = vector.shape_cast %32 : vector<32x1xf32> to vector<1x32x1xf32>
      tpu.vector_store %arg7[%c0_26, %c0_27, %c0_28], %35 {strides = array<i32>} : memref<1x32x1xf32, #tpu.memory_space<vmem>>, vector<1x32x1xf32>,
    } else {
    }
    return
  }
  func.func @transform_0(%arg0: i32, %arg1: i32) -> (i32, i32, i32) {
    %c0_i32 = arith.constant 0 : i32
    %c0_i32_0 = arith.constant 0 : i32
    return %arg0, %c0_i32, %arg1 : i32, i32, i32
  }
  func.func @transform_1(%arg0: i32, %arg1: i32) -> (i32, i32) {
    %c0_i32 = arith.constant 0 : i32
    %c0_i32_0 = arith.constant 0 : i32
    %c0_i32_1 = arith.constant 0 : i32
    return %c0_i32, %c0_i32_0 : i32, i32
  }
  func.func @transform_2(%arg0: i32, %arg1: i32) -> (i32, i32) {
    %c0_i32 = arith.constant 0 : i32
    %c0_i32_0 = arith.constant 0 : i32
    %c0_i32_1 = arith.constant 0 : i32
    return %c0_i32, %c0_i32_0 : i32, i32
  }
  func.func @transform_3(%arg0: i32, %arg1: i32) -> (i32, i32) {
    %c0_i32 = arith.constant 0 : i32
    %c0_i32_0 = arith.constant 0 : i32
    %c0_i32_1 = arith.constant 0 : i32
    return %c0_i32, %c0_i32_0 : i32, i32
  }
  func.func @transform_4(%arg0: i32, %arg1: i32) -> (i32, i32) {
    %c0_i32 = arith.constant 0 : i32
    %c0_i32_0 = arith.constant 0 : i32
    %c0_i32_1 = arith.constant 0 : i32
    return %c0_i32, %c0_i32_0 : i32, i32
  }
  func.func @transform_5(%arg0: i32, %arg1: i32) -> (i32, i32, i32) {
    %c0_i32 = arith.constant 0 : i32
    %c0_i32_0 = arith.constant 0 : i32
    %c0_i32_1 = arith.constant 0 : i32
    return %arg0, %c0_i32, %c0_i32_0 : i32, i32, i32
  }
}

</mosaic_0001>

<bundles_post_ra>
// kernel: tpu_custom_call.1
= control target key start
LH: loop header
LB: loop body
LE: loop exit
PB: predicated region body
PF: predicated region fallthrough
CT: control target
= control target key end

     0   :  { %10 = vsyncpa [#allocation4], 0  ;;  %s1019_s0 = inlined_call_operand.hbm [shape: f32[2,32,256], index: 0, kind: input, shape index: {}]   ;;  %s1020_s1 = inlined_call_operand.vmem [shape: f32[8,32], index: 1, kind: input, shape index: {}]   ;;  %s1021_s2 = inlined_call_operand.vmem [shape: f32[8,1], index: 2, kind: input, shape index: {}]   ;;  %s1022_s3 = inlined_call_operand.vmem [shape: f32[32,8], index: 3, kind: input, shape index: {}]   ;;  %s1023_s4 = inlined_call_operand.vmem [shape: f32[32,1], index: 4, kind: input, shape index: {}]   ;;  %s1024_s5 = inlined_call_operand.vmem [shape: f32[2,32,1], index: 5, kind: output, shape index: {}]  }
   0x1   :  { %12 = vsyncpa [#allocation4 + $0x1], 0  ;;  %s853_s18 = smov 0   ;;  %s855_s19 = smov 0  }
   0x2   :  { %s857_s20 = smov 0   ;;  %s859_s21 = smov 0  }
   0x3   :  { %s861_s22 = smov 0   ;;  %s863_s23 = smov 0  }
   0x4 LB: > { %s604_s24 = sadd.s32 4294967295, %s815_s23   ;;  %s30_s25 = sadd.s32 1, %s811_s22  ;;  %s815_s23 = sphi %s863_s23, %s18_s23   ;;  %s811_s22 = sphi %s861_s22, %s1032_s22   ;;  %s807_s21 = sphi %s859_s21, %s1031_s21   ;;  %s803_s20 = sphi %s857_s20, %s1030_s20   ;;  %s799_s19 = sphi %s855_s19, %s1029_s19   ;;  %s795_s18 = sphi %s853_s18, %s1028_s18  }
   0x5   : > { %p32_p0 = scmp.ge.s32.totalorder %s30_s25, 2  ;;  %s39_s26 = sadd.s32 1, %s803_s20 }
   0x6   : > { %p46_p1 = scmp.ne.s32.totalorder %s803_s20, %s799_s19  ;;  %p47_p2 = scmp.eq.s32.totalorder %s815_s23, 0 }
   0x7   : > { %s1034_s25 = smov (%p32_p0, %s30_s25), 0  ;;  %p52_p4 = scmp.ne.s32.totalorder %s799_s19, %s795_s18 }
   0x8   : > { %p889_p3 = por %p47_p2, %p46_p1  ;;  %s34_s28 = ssub.s32 %s811_s22, %s1034_s25 }
   0x9   : > { %p53_p5 = scmp.eq.s32.totalorder %s604_s24, 0  ;;  %p37_p6 = scmp.eq.s32.totalorder %s34_s28, 0 }
   0xa   : > { %p665_p8 = scmp.lt.s32.totalorder %s815_s23, 2  ;;  %s198_s6 = sand.u32 1, %s803_s20  }
   0xb   : > { %p896_p7 = por %p53_p5, %p52_p4  ;;  %s622_s7 = sshll.u32 %s811_s22, 10 }
   0xc   : > { %s902_s30 = scalar_select %p37_p6, %s803_s20, %s39_s26  }
   0xd   : > { %s608_s8 = sshll.u32 %s198_s6, 6  ;;  %s909_s11 = scalar_lea.hbm %s1019_s0, %s622_s7 }
   0xe   : > { %s202_s12 = scalar_lea.vmem [#allocation3], %s608_s8  ;;  %p913_p9 = pnand %p665_p8, %p889_p3 }
   0xf   : > { %s211_s13 = sshll.u32 %s202_s12, 4  ;;  %s919_s15 = scalar_lea.sflag [#allocation4], %s198_s6  ;;  %s917_s13 = int_to_ptr.vmem [resolvable:$true] %s211_s13 }
  0x10   : > { %s735_s16 = scalar_lea.hbm %s909_s11, 1024  ;;  %p737_p11 = pneg %p913_p9 }
  0x11   : > { %p736_p10 = scmp.ne.s32.totalorder %s909_s11, %s735_s16  ;;  %s740_s24 = scalar_lea.hbm %s1019_s0, 2048 }
  0x12   : > { %p741_p0 = scmp.lt.u32.totalorder %s909_s11, %s1019_s0  ;;  %p742_p1 = scmp.lt.u32.totalorder %s740_s24, %s735_s16 }
  0x13   : > { %p738_p12 = pnand %p737_p11, %p736_p10  ;;  %p744_p3 = scmp.lt.u32.totalorder %s735_s16, %s909_s11 }
  0x14   : > { %p743_p2 = por %p742_p1, %p741_p0 }
  0x15   : > { %p739_p13 = pneg %p738_p12 }
  0x16   : > { %p745_p4 = por %p744_p3, %p743_p2 }
  0x18   : > { %p746_p5 = pnand %p745_p4, %p739_p13 }
  0x1a   : > { %749 = shalt.err (!%p746_p5)
}
  0x1b   : > { %s750_s28 = scalar_lea.vmem %s917_s13, 1024  ;;  %s817_s6 = smov [#allocation3]  }
  0x1c   : > { %p751_p6 = scmp.ne.s32.totalorder %s917_s13, %s750_s28  ;;  %s755_s7 = sshll.u32 %s817_s6, 4  ;;  %s756_s7 = int_to_ptr.vmem [resolvable:$false] %s755_s7 }
  0x1d   : > { %s757_s8 = scalar_lea.vmem %s756_s7, 2048  ;;  %p758_p12 = scmp.lt.s32.totalorder %s917_s13, %s756_s7 }
  0x1e   : > { %p753_p8 = pnand %p751_p6, %p737_p11  ;;  %p759_p0 = scmp.lt.s32.totalorder %s757_s8, %s750_s28 }
  0x20   : > { %p754_p10 = pneg %p753_p8  ;;  %p760_p1 = por %p759_p0, %p758_p12 }
  0x22   : > { %p761_p2 = pnand %p760_p1, %p754_p10 }
  0x24   : > { %764 = shalt.err (!%p761_p2)
}
  0x25   : > { %s818_s9 = smov 256   ;;  %s819_s10 = smov 16  }
  0x26   : > { %664 = dma.hbm_to_vmem [thread:$0]  (!%p913_p9), %s909_s11, 1024, %s917_s13, %s919_s15, %s818_s9, %s818_s9, %s819_s10  }
  0x27   : > { %p611_p11 = scmp.ge.s32.totalorder %s815_s23, 1  ;;  %p219_p13 = scmp.lt.s32.totalorder %s815_s23, 3 }
  0x29   : > { %p220_p3 = pnand %p611_p11, %p219_p13 }
  0x2a   : > { %s225_s12 = sand.u32 (!%p220_p3), 1, %s799_s19  }
  0x2b   : > { %223 = sbr.rel (%p220_p3) target bundleno = 688 (0x2b0), region = 40  ;;  %s612_s16 = sshll.u32 (!%p220_p3), %s225_s12, 6 }
  0x2c   : > { %s226_s17 = scalar_lea.sflag (!%p220_p3), [#allocation4], %s225_s12  ;;  %s229_s18 = scalar_lea.vmem (!%p220_p3), [#allocation3], %s612_s16 }
  0x32   : > { %790 = dma.done.wait (%p896_p7), %s226_s17, 1024  }
  0x33   : > { %792 = vsyncadd (%p896_p7), %s226_s17, 4294966272  ;;  %vm266_vm0 = vcmask 7168   ;;  %v820_v0 = vmov 0.0   ;;  %v275_v1 = vld [vmem:[%s229_s18 + $0x20] sm:$0xff]  ;;  %v276_v2 = vld [vmem:[%s229_s18 + $0x28] sm:$0xff]  ;;  %v821_v13 = vmov 0.0|0.0  }
  0x34   : > { %269 = vst.msk [vmem:[#allocation2 + $0x10] sm:$0xff] %vm266_vm0, %v820_v0  ;;  %267 = vst.msk [vmem:[#allocation2] sm:$0xff] %vm266_vm0, %v820_v0  ;;  %v271_v3 = vld [vmem:[%s229_s18] sm:$0xff]  ;;  %v289_v4 = vadd.f32 %v276_v2, %v275_v1  ;;  %v272_v5 = vld [vmem:[%s229_s18 + $0x8] sm:$0xff]  ;;  %653 = vmatprep.subr.bf16.mxu0 %v821_v13  ;;  %vm822_vm1 = vmmov 0   ;;  %vm317_vm2 = vcmask 261120  }
  0x35   : > { %268 = vst.msk [vmem:[#allocation2 + $0x8] sm:$0xff] %vm266_vm0, %v820_v0  ;;  %270 = vst.msk [vmem:[#allocation2 + $0x18] sm:$0xff] %vm266_vm0, %v820_v0  ;;  %v277_v6 = vld [vmem:[%s229_s18 + $0x30] sm:$0xff]  ;;  %v278_v7 = vld [vmem:[%s229_s18 + $0x38] sm:$0xff]  ;;  %v283_v8 = vadd.f32 %v272_v5, %v271_v3  ;;  %642 = vmatprep.mubr.msk.f32.mxu0 %vm822_vm1, %v820_v0  ;;  %vm400_vm3 = vcmask 64512   ;;  %p257_p7 = scmp.lt.s32.totalorder %s807_s21, 1 }
  0x36   : > { %v273_v9 = vld [vmem:[%s229_s18 + $0x10] sm:$0xff]  ;;  %v274_v10 = vld [vmem:[%s229_s18 + $0x18] sm:$0xff]  ;;  %290 = vadd.xlane.f32.xlu1 %v289_v4  ;;  %v292_v11 = vadd.f32 %v278_v7, %v277_v6  ;;  %v315_v36 = vld [vmem:[%s1020_s1] sm:$0xff] }
  0x37   : > { %284 = vadd.xlane.f32.xlu0 %v283_v8  ;;  %v286_v12 = vadd.f32 %v274_v10, %v273_v9  ;;  %v392_v37 = vld [vmem:[%s1022_s3] sm:$0xff]  ;;  %v393_v43 = vld [vmem:[%s1022_s3 + $0x8] sm:$0xff]  ;;  %v394_v44 = vld [vmem:[%s1022_s3 + $0x10] sm:$0xff]  ;;  %s1036_s21 = smov (!%p257_p7, %s807_s21), 1 }
  0x38   : > { %647 = vmatprep.mubr.msk.f32.mxu1 %vm400_vm3, %v392_v37  ;;  %v316_v38 = vld [vmem:[%s1021_s2] sm:$0xff]  ;;  %v395_v45 = vld [vmem:[%s1022_s3 + $0x18] sm:$0xff]  ;;  %v397_v46 = vld [vmem:[%s1023_s4 + $0x8] sm:$0xff]  ;;  %s623_s13 = sshll.u32 %s1036_s21, 5 }
  0x39   : > { %v396_v47 = vld [vmem:[%s1023_s4] sm:$0xff]  ;;  %v399_v52 = vld [vmem:[%s1023_s4 + $0x18] sm:$0xff]  ;;  %v398_v54 = vld [vmem:[%s1023_s4 + $0x10] sm:$0xff]  ;;  %s261_s24 = scalar_lea.vmem %s1024_s5, %s623_s13 }
  0x3a   : > { %293 = vadd.xlane.f32.xlu1 %v292_v11 }
  0x3b   : > { %287 = vadd.xlane.f32.xlu0 %v286_v12  ;;  %v281_v14 = vld [vmem:[#allocation2 + $0x10] sm:$0xff]  ;;  %v279_v15 = vld [vmem:[#allocation2] sm:$0xff] }
  0x3c   : > { %v282_v20 = vld [vmem:[#allocation2 + $0x18] sm:$0xff]  ;;  %v280_v21 = vld [vmem:[#allocation2 + $0x8] sm:$0xff] }
  0xc3   : > { %v291_v16 = vpop.xlane.xlu1 %290 }
  0xc4   : > { %v297_v17 = vadd.f32 %v291_v16, %v281_v14  ;;  %v285_v18 = vpop.xlane.xlu0 %284 }
  0xc5   : > { %v295_v19 = vadd.f32 %v285_v18, %v279_v15 }
  0xc6   : > { %302 = vst.msk [vmem:[#allocation2 + $0x10] sm:$0xff] %vm266_vm0, %v297_v17 }
  0xc7   : > { %300 = vst.msk [vmem:[#allocation2] sm:$0xff] %vm266_vm0, %v295_v19  ;;  %v294_v22 = vpop.xlane.xlu1 %293 }
  0xc8   : > { %v298_v23 = vadd.f32 %v294_v22, %v282_v20  ;;  %v288_v24 = vpop.xlane.xlu0 %287 }
  0xc9   : > { %v296_v25 = vadd.f32 %v288_v24, %v280_v21 }
  0xca   : > { %303 = vst.msk [vmem:[#allocation2 + $0x18] sm:$0xff] %vm266_vm0, %v298_v23 }
  0xcb   : > { %301 = vst.msk [vmem:[#allocation2 + $0x8] sm:$0xff] %vm266_vm0, %v296_v25 }
  0xcd   : > { %v309_v28 = vld [vmem:[#allocation2 + $0x10] sm:$0xff] }
  0xce   : > { %v307_v26 = vld [vmem:[#allocation2] sm:$0xff]  ;;  %v313_v33 = vmul.f32 0.00390625, %v309_v28 }
  0xcf   : > { %v311_v30 = vmul.f32 0.00390625, %v307_v26 }
  0xd1   : > { %v310_v29 = vld [vmem:[#allocation2 + $0x18] sm:$0xff] }
  0xd2   : > { %v308_v27 = vld [vmem:[#allocation2 + $0x8] sm:$0xff]  ;;  %v314_v34 = vmul.f32 0.00390625, %v310_v29 }
  0xd3   : > { %v312_v31 = vmul.f32 0.00390625, %v308_v27 }
  0xd4   : > { %v657_v35 = vpack.c.bf16 %v314_v34, %v313_v33 }
  0xd5   : > { %v654_v32 = vpack.c.bf16 %v312_v31, %v311_v30 }
  0xd7   : > { %655 = vmatpush3.bf16.msra.mxu0 %v654_v32 }
  0xd8   : > { %656 = vmatprep.subr.bf16.mxu0 %v821_v13 }
  0xdb   : > { %658 = vmatpush3.bf16.msra.mxu0 %v657_v35 }
  0xde   : > { %643 = vmatmul.mubr.msk.f32.vlgmr.msra.gmra.mrb[0].mxu0 %vm317_vm2, %v315_v36 }
 0x1b1   : > { %v387_v39 = vpop.f32.mrb[0].mxu0 }
 0x1b2   : > { %v388_v40 = vadd.f32 %v387_v39, %v316_v38  ;;  %v644_v41 = vpop.f32.mrb[1].mxu0 }
 0x1b4   : > { %v391_v42 = vmax.f32 %v388_v40, 0.0 }
 0x1b6   : > { %645 = vmatprep.subr.mxu1 %v391_v42 }
 0x1b7   : > { %646 = vmatpush3.msra.mxu1 %v391_v42 }
 0x1b8   : > { %648 = vmatmul.mubr.msk.f32.vlgmr.msra.gmra.mrb[0].mxu1 %vm400_vm3, %v393_v43 }
 0x1b9   : > { %650 = vmatprep.mubr.msk.f32.mxu1 %vm400_vm3, %v394_v44 }
 0x1bc   : > { %651 = vmatmul.mubr.msk.f32.gmra.mrb[2].mxu1 %vm400_vm3, %v395_v45 }
 0x28b   : > { %v649_v48 = vpop.f32.mrb[0].mxu1 }
 0x28c   : > { %v485_v49 = vadd.f32 %v649_v48, %v397_v46  ;;  %v479_v50 = vpop.f32.mrb[1].mxu1 }
 0x28d   : > { %v480_v51 = vadd.f32 %v479_v50, %v396_v47 }
 0x28e   : > { %v499_v53 = vsub.f32 0.0, %v485_v49 }
 0x28f   : > { %v498_v55 = vsub.f32 0.0, %v480_v51  ;;  %v652_v56 = vpop.f32.mrb[2].mxu1 }
 0x290   : > { %v504_v57 = vmul.f32 1.442695, %v499_v53  ;;  %v495_v58 = vadd.f32 %v652_v56, %v399_v52  ;;  %v489_v59 = vpop.f32.mrb[3].mxu1 }
 0x291   : > { %v502_v60 = vmul.f32 1.442695, %v498_v55  ;;  %v490_v61 = vadd.f32 %v489_v59, %v398_v54 }
 0x292   : > { %719 = vpow2.f32 %v504_v57  ;;  %v501_v62 = vsub.f32 0.0, %v495_v58 }
 0x293   : > { %721 = vpow2.f32 %v502_v60  ;;  %v500_v63 = vsub.f32 0.0, %v490_v61 }
 0x294   : > { %v508_v0 = vmul.f32 1.442695, %v501_v62 }
 0x295   : > { %v506_v1 = vmul.f32 1.442695, %v500_v63 }
 0x296   : > { %723 = vpow2.f32 %v508_v0 }
 0x297   : > { %725 = vpow2.f32 %v506_v1 }
 0x29c   : > { %v720_v2 = vpop.eup %719 }
 0x29d   : > { %v722_v3 = vpop.eup %721  ;;  %v511_v4 = vadd.f32 1.0, %v720_v2 }
 0x29e   : > { %v510_v5 = vadd.f32 1.0, %v722_v3 }
 0x29f   : > { %727 = vrcp.f32 %v511_v4 }
 0x2a0   : > { %v724_v6 = vpop.eup %723  ;;  %729 = vrcp.f32 %v510_v5 }
 0x2a1   : > { %v726_v7 = vpop.eup %725  ;;  %v513_v8 = vadd.f32 1.0, %v724_v6 }
 0x2a2   : > { %v512_v9 = vadd.f32 1.0, %v726_v7 }
 0x2a3   : > { %731 = vrcp.f32 %v513_v8 }
 0x2a4   : > { %733 = vrcp.f32 %v512_v9 }
 0x2a9   : > { %v728_v10 = vpop.eup %727 }
 0x2aa   : > { %v730_v11 = vpop.eup %729  ;;  %523 = vst.msk [vmem:[%s261_s24 + $0x8] sm:$0xff] %vm266_vm0, %v728_v10 }
 0x2ab   : > { %522 = vst.msk [vmem:[%s261_s24] sm:$0xff] %vm266_vm0, %v730_v11 }
 0x2ad   : > { %v732_v12 = vpop.eup %731 }
 0x2ae   : > { %v734_v13 = vpop.eup %733  ;;  %525 = vst.msk [vmem:[%s261_s24 + $0x18] sm:$0xff] %vm266_vm0, %v732_v12 }
 0x2af   : > { %524 = vst.msk [vmem:[%s261_s24 + $0x10] sm:$0xff] %vm266_vm0, %v734_v13 }
 0x2b0 PF: > { %s18_s23 = sadd.s32 1, %s815_s23   ;;  %s1028_s18 = smov %s799_s19 }
 0x2b1   : > { %p15_p9 = scmp.ge.s32.totalorder %s18_s23, 4   ;;  %s1029_s19 = smov %s803_s20 }
 0x2b2   : > { %s1030_s20 = smov %s902_s30  ;;  %s1031_s21 = smov %s811_s22 }
 0x2b3   : > { %s1032_s22 = smov %s1034_s25  ;;  %17 = sbr.rel (!%p15_p9) target bundleno = 4 (0x4), region = 88 }
 0x2ba   :  { %547 = vsyncpa [#allocation4], 1 }
 0x2bb   :  { %549 = vsyncpa [#allocation4 + $0x1], 1 }

</bundles_post_ra>
